<compile_context>
chip_gen: v6e
topology: v6e:2x2x1
jax: 0.10.0
libtpu: 0.0.40
codegen_flags: <defaults>
</compile_context>

<pallas_src>
import jax
import jax.numpy as jnp
from jax.experimental import pallas as pl
from jax.experimental.pallas import tpu as pltpu


def _round_up(x, m):
    return ((x + m - 1) // m) * m


def mlp_kernel(x_ref,
               w1_ref, b1_ref,
               w2_ref, b2_ref,
               w3_ref, b3_ref,
               w4_ref, b4_ref,
               o_ref):
    # Layer 1: Linear(no_features -> first_hidden) + ReLU   (bf16 matmul, f32 accumulate)
    h = jnp.dot(x_ref[...], w1_ref[...], preferred_element_type=jnp.float32) + b1_ref[...]
    h = jnp.maximum(h, 0.0).astype(jnp.bfloat16)
    # Dropout(p=0.2): identity at inference.

    # Layer 2: Linear(first_hidden -> no_hidden) + ReLU
    h = jnp.dot(h, w2_ref[...], preferred_element_type=jnp.float32) + b2_ref[...]
    h = jnp.maximum(h, 0.0).astype(jnp.bfloat16)

    # Layer 3: Linear(no_hidden -> no_hidden) + ReLU
    h = jnp.dot(h, w3_ref[...], preferred_element_type=jnp.float32) + b3_ref[...]
    h = jnp.maximum(h, 0.0).astype(jnp.bfloat16)

    # Layer 4: Linear(no_hidden -> no_labels) + Sigmoid
    z = jnp.dot(h, w4_ref[...], preferred_element_type=jnp.float32) + b4_ref[...]
    # sigmoid(z) = 1 / (1 + exp(-z)): exp on the EUP, approx reciprocal also on the EUP
    # (frees VALU slots in the epilogue vs a vector divide).
    o_ref[...] = pl.reciprocal(1.0 + jnp.exp(-z), approx=True).astype(o_ref.dtype)


def mlp_forward(x, params, *, tb=512):
    """x: [B, no_features] float32. params: dict of weights ([in, out]) and biases ([1, out])."""
    B, F = x.shape

    # Cast streaming input + weights to bf16 (native MXU input); biases stay f32.
    w1 = params["w1"].astype(jnp.bfloat16)
    w2 = params["w2"].astype(jnp.bfloat16)
    w3 = params["w3"].astype(jnp.bfloat16)
    w4 = params["w4"].astype(jnp.bfloat16)
    b1 = params["b1"].astype(jnp.float32)
    b2 = params["b2"].astype(jnp.float32)
    b3 = params["b3"].astype(jnp.float32)
    b4 = params["b4"].astype(jnp.float32)
    no_labels = w4.shape[1]

    # Cap the tile so the working set stays well under v7x's 64 MiB VMEM, then shrink it
    # for small batches so they don't pay for a huge padded tile. tb must be a multiple
    # of 8 (sublane granularity); the default 512 is a multiple of 128.
    tb = min(tb, 4096)
    tb_eff = tb if B >= tb else _round_up(B, 8)
    Bp = _round_up(B, tb_eff)

    xb = x.astype(jnp.bfloat16)
    if Bp != B:
        # Zero-pad ragged batches; padded rows are sliced off below.
        xb = jnp.pad(xb, ((0, Bp - B), (0, 0)))

    # Grid-invariant operands: constant index_map -> the block index never changes, so the
    # Pallas pipeline keeps them resident in VMEM and does not re-DMA them per step.
    def full(arr):
        return pl.BlockSpec(arr.shape, lambda i: (0, 0))

    out = pl.pallas_call(
        mlp_kernel,
        out_shape=jax.ShapeDtypeStruct((Bp, no_labels), jnp.float32),
        grid_spec=pltpu.PrefetchScalarGridSpec(
            num_scalar_prefetch=0,
            grid=(Bp // tb_eff,),
            in_specs=[
                pl.BlockSpec((tb_eff, F), lambda i: (i, 0)),   # x: tiled over batch
                full(w1), full(b1),
                full(w2), full(b2),
                full(w3), full(b3),
                full(w4), full(b4),
            ],
            out_specs=pl.BlockSpec((tb_eff, no_labels), lambda i: (i, 0)),
        ),
        compiler_params=pltpu.CompilerParams(
            # Batch axis is independent -> megacore-shardable on v7x (keep B >= 2*tb for
            # realistic workloads so both TensorCores get work).
            dimension_semantics=("parallel",),
            # Raise scoped VMEM above the v5e 16 MiB default so large batch tiles fit.
            vmem_limit_bytes=32 * 1024 * 1024,
        ),
    )(xb, w1, b1, w2, b2, w3, b3, w4, b4)

    return out[:B] if Bp != B else out


def init_params(key, no_features, no_hidden, no_labels, first_hidden=128):
    """Deterministic init mimicking PyTorch Linear default (U[-1/sqrt(in), 1/sqrt(in)]).
    Weights stored as [in, out]."""
    dims = [(no_features, first_hidden),
            (first_hidden, no_hidden),
            (no_hidden, no_hidden),
            (no_hidden, no_labels)]
    params = {}
    for idx, (din, dout) in enumerate(dims, start=1):
        key, kw, kb = jax.random.split(key, 3)
        bound = 1.0 / (din ** 0.5)
        params[f"w{idx}"] = jax.random.uniform(
            kw, (din, dout), jnp.float32, minval=-bound, maxval=bound)
        params[f"b{idx}"] = jax.random.uniform(
            kb, (1, dout), jnp.float32, minval=-bound, maxval=bound)
    return params


def mlp_reference_f32(x, params):
    """Pure-JAX f32 reference (matches the PyTorch module in eval mode)."""
    h = jnp.maximum(x @ params["w1"] + params["b1"], 0.0)
    h = jnp.maximum(h @ params["w2"] + params["b2"], 0.0)
    h = jnp.maximum(h @ params["w3"] + params["b3"], 0.0)
    h = h @ params["w4"] + params["b4"]
    return jax.nn.sigmoid(h)


def mlp_reference_bf16(x, params):
    """Pure-JAX reference mirroring the kernel's bf16-matmul / f32-accumulate recipe."""
    def lin(h, w, b):
        return jnp.dot(h.astype(jnp.bfloat16), w.astype(jnp.bfloat16),
                       preferred_element_type=jnp.float32) + b
    h = jnp.maximum(lin(x, params["w1"], params["b1"]), 0.0)
    h = jnp.maximum(lin(h, params["w2"], params["b2"]), 0.0)
    h = jnp.maximum(lin(h, params["w3"], params["b3"]), 0.0)
    z = lin(h, params["w4"], params["b4"])
    return jax.nn.sigmoid(z)


if __name__ == "__main__":
    # Small shapes consistent with the module: MLP(no_features=32, no_hidden=64, no_labels=4)
    B, no_features, no_hidden, no_labels, first_hidden = 8, 32, 64, 4, 128

    key = jax.random.PRNGKey(0)
    key, kx = jax.random.split(key)
    x = jax.random.normal(kx, (B, no_features), jnp.float32)
    params = init_params(key, no_features, no_hidden, no_labels, first_hidden)

    out = mlp_forward(x, params)
    out = jax.block_until_ready(out)
    assert out.shape == (B, no_labels)

    ref_bf16 = mlp_reference_bf16(x, params)
    ref_f32 = mlp_reference_f32(x, params)
    # bf16 matmuls + approx reciprocal in the epilogue -> compare against the matched
    # bf16 reference tightly and the pure-f32 reference loosely.
    assert jnp.allclose(out, ref_bf16, atol=1e-2, rtol=1e-2)
    assert jnp.allclose(out, ref_f32, atol=3e-2, rtol=3e-2)

    print("KERNEL_OK")
</pallas_src>

<mosaic_0001>
module attributes {stable_mosaic.version = 11 : i64} {
  func.func @mlp_kernel(%arg0: i32, %arg1: memref<8x32xbf16, #tpu.memory_space<vmem>>, %arg2: memref<32x128xbf16, #tpu.memory_space<vmem>>, %arg3: memref<1x128xf32, #tpu.memory_space<vmem>>, %arg4: memref<128x64xbf16, #tpu.memory_space<vmem>>, %arg5: memref<1x64xf32, #tpu.memory_space<vmem>>, %arg6: memref<64x64xbf16, #tpu.memory_space<vmem>>, %arg7: memref<1x64xf32, #tpu.memory_space<vmem>>, %arg8: memref<64x4xbf16, #tpu.memory_space<vmem>>, %arg9: memref<1x4xf32, #tpu.memory_space<vmem>>, %arg10: memref<8x4xf32, #tpu.memory_space<vmem>>) attributes {dimension_semantics = [#tpu.dimension_semantics<parallel>], iteration_bounds = array<i64: 1>, scalar_prefetch = 0 : i64, scratch_operands = 0 : i64, tpu.core_type = #tpu.core_type<tc>, window_params = [{transform_indices = @transform_0, window_bounds = array<i64: 8, 32>}, {pipeline_mode = #tpu.pipeline_mode<synchronous>, transform_indices = @transform_1, window_bounds = array<i64: 32, 128>}, {pipeline_mode = #tpu.pipeline_mode<synchronous>, transform_indices = @transform_2, window_bounds = array<i64: 1, 128>}, {pipeline_mode = #tpu.pipeline_mode<synchronous>, transform_indices = @transform_3, window_bounds = array<i64: 128, 64>}, {pipeline_mode = #tpu.pipeline_mode<synchronous>, transform_indices = @transform_4, window_bounds = array<i64: 1, 64>}, {pipeline_mode = #tpu.pipeline_mode<synchronous>, transform_indices = @transform_5, window_bounds = array<i64: 64, 64>}, {pipeline_mode = #tpu.pipeline_mode<synchronous>, transform_indices = @transform_6, window_bounds = array<i64: 1, 64>}, {pipeline_mode = #tpu.pipeline_mode<synchronous>, transform_indices = @transform_7, window_bounds = array<i64: 64, 4>}, {pipeline_mode = #tpu.pipeline_mode<synchronous>, transform_indices = @transform_8, window_bounds = array<i64: 1, 4>}, {transform_indices = @transform_9, window_bounds = array<i64: 8, 4>}]} {
    %c0 = arith.constant 0 : index
    %c0_0 = arith.constant 0 : index
    %0 = vector.load %arg1[%c0, %c0_0] : memref<8x32xbf16, #tpu.memory_space<vmem>>, vector<8x32xbf16>
    %c0_1 = arith.constant 0 : index
    %c0_2 = arith.constant 0 : index
    %1 = vector.load %arg2[%c0_1, %c0_2] : memref<32x128xbf16, #tpu.memory_space<vmem>>, vector<32x128xbf16>
    %cst = arith.constant dense<0.000000e+00> : vector<8x128xf32>
    %2 = tpu.matmul %0, %1, %cst {dimension_numbers = #tpu.dot_dimension_numbers<[1], [0], [0], [1], [0, 0, 1, 1], [], []>} : vector<8x32xbf16>, vector<32x128xbf16>, vector<8x128xf32> -> vector<8x128xf32>
    %c0_3 = arith.constant 0 : index
    %c0_4 = arith.constant 0 : index
    %3 = vector.load %arg3[%c0_3, %c0_4] : memref<1x128xf32, #tpu.memory_space<vmem>>, vector<1x128xf32>
    %4 = vector.broadcast %3 : vector<1x128xf32> to vector<8x128xf32>
    %5 = arith.addf %2, %4 : vector<8x128xf32>
    %cst_5 = arith.constant 0.000000e+00 : f32
    %6 = vector.broadcast %cst_5 : f32 to vector<8x128xf32>
    %7 = arith.maximumf %5, %6 : vector<8x128xf32>
    %8 = arith.truncf %7 : vector<8x128xf32> to vector<8x128xbf16>
    %c0_6 = arith.constant 0 : index
    %c0_7 = arith.constant 0 : index
    %9 = vector.load %arg4[%c0_6, %c0_7] : memref<128x64xbf16, #tpu.memory_space<vmem>>, vector<128x64xbf16>
    %cst_8 = arith.constant dense<0.000000e+00> : vector<8x64xf32>
    %10 = tpu.matmul %8, %9, %cst_8 {dimension_numbers = #tpu.dot_dimension_numbers<[1], [0], [0], [1], [0, 0, 1, 1], [], []>} : vector<8x128xbf16>, vector<128x64xbf16>, vector<8x64xf32> -> vector<8x64xf32>
    %c0_9 = arith.constant 0 : index
    %c0_10 = arith.constant 0 : index
    %11 = vector.load %arg5[%c0_9, %c0_10] : memref<1x64xf32, #tpu.memory_space<vmem>>, vector<1x64xf32>
    %12 = vector.broadcast %11 : vector<1x64xf32> to vector<8x64xf32>
    %13 = arith.addf %10, %12 : vector<8x64xf32>
    %cst_11 = arith.constant 0.000000e+00 : f32
    %14 = vector.broadcast %cst_11 : f32 to vector<8x64xf32>
    %15 = arith.maximumf %13, %14 : vector<8x64xf32>
    %16 = arith.truncf %15 : vector<8x64xf32> to vector<8x64xbf16>
    %c0_12 = arith.constant 0 : index
    %c0_13 = arith.constant 0 : index
    %17 = vector.load %arg6[%c0_12, %c0_13] : memref<64x64xbf16, #tpu.memory_space<vmem>>, vector<64x64xbf16>
    %cst_14 = arith.constant dense<0.000000e+00> : vector<8x64xf32>
    %18 = tpu.matmul %16, %17, %cst_14 {dimension_numbers = #tpu.dot_dimension_numbers<[1], [0], [0], [1], [0, 0, 1, 1], [], []>} : vector<8x64xbf16>, vector<64x64xbf16>, vector<8x64xf32> -> vector<8x64xf32>
    %c0_15 = arith.constant 0 : index
    %c0_16 = arith.constant 0 : index
    %19 = vector.load %arg7[%c0_15, %c0_16] : memref<1x64xf32, #tpu.memory_space<vmem>>, vector<1x64xf32>
    %20 = vector.broadcast %19 : vector<1x64xf32> to vector<8x64xf32>
    %21 = arith.addf %18, %20 : vector<8x64xf32>
    %cst_17 = arith.constant 0.000000e+00 : f32
    %22 = vector.broadcast %cst_17 : f32 to vector<8x64xf32>
    %23 = arith.maximumf %21, %22 : vector<8x64xf32>
    %24 = arith.truncf %23 : vector<8x64xf32> to vector<8x64xbf16>
    %c0_18 = arith.constant 0 : index
    %c0_19 = arith.constant 0 : index
    %25 = vector.load %arg8[%c0_18, %c0_19] : memref<64x4xbf16, #tpu.memory_space<vmem>>, vector<64x4xbf16>
    %cst_20 = arith.constant dense<0.000000e+00> : vector<8x4xf32>
    %26 = tpu.matmul %24, %25, %cst_20 {dimension_numbers = #tpu.dot_dimension_numbers<[1], [0], [0], [1], [0, 0, 1, 1], [], []>} : vector<8x64xbf16>, vector<64x4xbf16>, vector<8x4xf32> -> vector<8x4xf32>
    %c0_21 = arith.constant 0 : index
    %c0_22 = arith.constant 0 : index
    %27 = vector.load %arg9[%c0_21, %c0_22] : memref<1x4xf32, #tpu.memory_space<vmem>>, vector<1x4xf32>
    %28 = vector.broadcast %27 : vector<1x4xf32> to vector<8x4xf32>
    %29 = arith.addf %26, %28 : vector<8x4xf32>
    %cst_23 = arith.constant 0.000000e+00 : f32
    %30 = vector.broadcast %cst_23 : f32 to vector<8x4xf32>
    %31 = arith.subf %30, %29 : vector<8x4xf32>
    %32 = math.exp %31 : vector<8x4xf32>
    %cst_24 = arith.constant 1.000000e+00 : f32
    %33 = vector.broadcast %cst_24 : f32 to vector<8x4xf32>
    %34 = arith.addf %33, %32 : vector<8x4xf32>
    %35 = tpu.reciprocal %34 {approx = true} : vector<8x4xf32> -> vector<8x4xf32>
    %c0_25 = arith.constant 0 : index
    %c0_26 = arith.constant 0 : index
    %36 = vector.load %arg10[%c0_25, %c0_26] : memref<8x4xf32, #tpu.memory_space<vmem>>, vector<8x4xf32>
    tpu.vector_store %arg10[%c0_25, %c0_26], %35 {strides = array<i32>} : memref<8x4xf32, #tpu.memory_space<vmem>>, vector<8x4xf32>,
    return
  }
  func.func @transform_0(%arg0: i32) -> (i32, i32) {
    %c0_i32 = arith.constant 0 : i32
    %c0_i32_0 = arith.constant 0 : i32
    return %arg0, %c0_i32 : i32, i32
  }
  func.func @transform_1(%arg0: i32) -> (i32, i32) {
    %c0_i32 = arith.constant 0 : i32
    %c0_i32_0 = arith.constant 0 : i32
    %c0_i32_1 = arith.constant 0 : i32
    return %c0_i32, %c0_i32_0 : i32, i32
  }
  func.func @transform_2(%arg0: i32) -> (i32, i32) {
    %c0_i32 = arith.constant 0 : i32
    %c0_i32_0 = arith.constant 0 : i32
    %c0_i32_1 = arith.constant 0 : i32
    return %c0_i32, %c0_i32_0 : i32, i32
  }
  func.func @transform_3(%arg0: i32) -> (i32, i32) {
    %c0_i32 = arith.constant 0 : i32
    %c0_i32_0 = arith.constant 0 : i32
    %c0_i32_1 = arith.constant 0 : i32
    return %c0_i32, %c0_i32_0 : i32, i32
  }
  func.func @transform_4(%arg0: i32) -> (i32, i32) {
    %c0_i32 = arith.constant 0 : i32
    %c0_i32_0 = arith.constant 0 : i32
    %c0_i32_1 = arith.constant 0 : i32
    return %c0_i32, %c0_i32_0 : i32, i32
  }
  func.func @transform_5(%arg0: i32) -> (i32, i32) {
    %c0_i32 = arith.constant 0 : i32
    %c0_i32_0 = arith.constant 0 : i32
    %c0_i32_1 = arith.constant 0 : i32
    return %c0_i32, %c0_i32_0 : i32, i32
  }
  func.func @transform_6(%arg0: i32) -> (i32, i32) {
    %c0_i32 = arith.constant 0 : i32
    %c0_i32_0 = arith.constant 0 : i32
    %c0_i32_1 = arith.constant 0 : i32
    return %c0_i32, %c0_i32_0 : i32, i32
  }
  func.func @transform_7(%arg0: i32) -> (i32, i32) {
    %c0_i32 = arith.constant 0 : i32
    %c0_i32_0 = arith.constant 0 : i32
    %c0_i32_1 = arith.constant 0 : i32
    return %c0_i32, %c0_i32_0 : i32, i32
  }
  func.func @transform_8(%arg0: i32) -> (i32, i32) {
    %c0_i32 = arith.constant 0 : i32
    %c0_i32_0 = arith.constant 0 : i32
    %c0_i32_1 = arith.constant 0 : i32
    return %c0_i32, %c0_i32_0 : i32, i32
  }
  func.func @transform_9(%arg0: i32) -> (i32, i32) {
    %c0_i32 = arith.constant 0 : i32
    %c0_i32_0 = arith.constant 0 : i32
    return %arg0, %c0_i32 : i32, i32
  }
}

</mosaic_0001>

<bundles_post_ra>
// kernel: tpu_custom_call.1
= control target key start
LH: loop header
LB: loop body
LE: loop exit
PB: predicated region body
PF: predicated region fallthrough
CT: control target
= control target key end

     0   :  { %v517_v0 = vmov 0.0   ;;  %vm518_vm0 = vmmov 0   ;;  %vm57_vm1 = vcmask 261120   ;;  %vm255_vm2 = vcmask 523264   ;;  %s669_s1 = inlined_call_operand.vmem [shape: bf16[32,128], index: 1, kind: input, shape index: {}]   ;;  %s670_s3 = inlined_call_operand.vmem [shape: bf16[128,64], index: 3, kind: input, shape index: {}]   ;;  %s671_s0 = inlined_call_operand.vmem [shape: bf16[8,32], index: 0, kind: input, shape index: {}]   ;;  %s672_s5 = inlined_call_operand.vmem [shape: bf16[64,64], index: 5, kind: input, shape index: {}]   ;;  %s673_s2 = inlined_call_operand.vmem [shape: f32[1,128], index: 2, kind: input, shape index: {}]   ;;  %s674_s7 = inlined_call_operand.vmem [shape: bf16[64,4], index: 7, kind: input, shape index: {}]   ;;  %s675_s4 = inlined_call_operand.vmem [shape: f32[1,64], index: 4, kind: input, shape index: {}]   ;;  %s676_s6 = inlined_call_operand.vmem [shape: f32[1,64], index: 6, kind: input, shape index: {}]   ;;  %s677_s8 = inlined_call_operand.vmem [shape: f32[1,4], index: 8, kind: input, shape index: {}]   ;;  %s678_s9 = inlined_call_operand.vmem [shape: f32[8,4], index: 9, kind: output, shape index: {}]  }
   0x1   :  { %441 = vmatprep.subr.bf16.mxu0 %v517_v0  ;;  %v495_v1 = vld [vmem:[%s669_s1 + $0x8] sm:$0xff]   ;;  %445 = vmatprep.mubr.msk.bf16.mxu0 %vm518_vm0, %v517_v0  ;;  %v496_v2 = vld [vmem:[%s669_s1] sm:$0xff]   ;;  %v497_v3 = vld [vmem:[%s670_s3 + $0x38] sm:$0xff]   ;;  %vm388_vm3 = vcmask 31744  }
   0x2   :  { %449 = vmatprep.subr.bf16.mxu1 %v517_v0  ;;  %465 = vmatprep.mubr.msk.bf16.mxu1 %vm518_vm0, %v517_v0  ;;  %v498_v4 = vld [vmem:[%s670_s3 + $0x30] sm:$0xff]   ;;  %v33_v5 = vld [vmem:[%s671_s0] sm:$0xf]  ;;  %v499_v6 = vld [vmem:[%s670_s3 + $0x28] sm:$0xff]  }
   0x3   :  { %442 = vmatpush3.bf16.msra.mxu0 %v495_v1  ;;  %450 = vmatpush3.bf16.msra.mxu1 %v497_v3  ;;  %v500_v7 = vld [vmem:[%s670_s3 + $0x20] sm:$0xff]   ;;  %v501_v8 = vld [vmem:[%s670_s3 + $0x18] sm:$0xff]   ;;  %v502_v9 = vld [vmem:[%s670_s3 + $0x10] sm:$0xff]  }
   0x4   :  { %443 = vmatprep.subr.bf16.mxu0 %v517_v0  ;;  %451 = vmatprep.subr.bf16.mxu1 %v517_v0  ;;  %v503_v10 = vld [vmem:[%s670_s3 + $0x8] sm:$0xff]   ;;  %v504_v11 = vld [vmem:[%s670_s3] sm:$0xff]   ;;  %v505_v12 = vld [vmem:[%s672_s5 + $0x18] sm:$0xff]  }
   0x5   :  { %v506_v13 = vld [vmem:[%s672_s5 + $0x10] sm:$0xff]   ;;  %v394_v14 = vld [vmem:[%s673_s2] ss:$0 sm:$0xff]  ;;  %v507_v22 = vld [vmem:[%s672_s5 + $0x8] sm:$0xff]  }
   0x6   :  { %v508_v23 = vld [vmem:[%s672_s5] sm:$0xff]   ;;  %v509_v30 = vld [vmem:[%s674_s7 + $0x18] sm:$0xff]   ;;  %v510_v33 = vld [vmem:[%s674_s7 + $0x10] sm:$0xff]  }
   0x7   :  { %444 = vmatpush3.bf16.msra.mxu0 %v496_v2  ;;  %452 = vmatpush3.bf16.msra.mxu1 %v498_v4  ;;  %v398_v24 = vld [vmem:[%s675_s4] ss:$0 sm:$0xff]  ;;  %v511_v34 = vld [vmem:[%s674_s7 + $0x8] sm:$0xff]  }
   0x8   :  { %469 = vmatprep.subr.bf16.mxu0 %v517_v0  ;;  %453 = vmatprep.subr.bf16.mxu1 %v517_v0  ;;  %v512_v35 = vld [vmem:[%s674_s7] sm:$0xff]  }
   0x9   :  { %v407_v36 = vld [vmem:[%s676_s6] ss:$0 sm:$0xff] }
   0xa   :  { %446 = vmatmul.mubr.msk.bf16.vlgmr.msra.gmra.mxu0 %vm57_vm1, %v33_v5  ;;  %v413_v44 = vld [vmem:[%s677_s8] ss:$0 sm:$0xff] }
   0xb   :  { %477 = vmatprep.mubr.msk.bf16.mxu0 %vm518_vm0, %v517_v0  ;;  %454 = vmatpush3.bf16.msra.mxu1 %v499_v6 }
   0xc   :  { %455 = vmatprep.subr.bf16.mxu1 %v517_v0  ;;  %470 = vmatpush3.bf16.msra.mxu0 %v505_v12 }
   0xd   :  { %471 = vmatprep.subr.bf16.mxu0 %v517_v0 }
   0xf   :  { %456 = vmatpush3.bf16.msra.mxu1 %v500_v7 }
  0x10   :  { %457 = vmatprep.subr.bf16.mxu1 %v517_v0  ;;  %472 = vmatpush3.bf16.msra.mxu0 %v506_v13 }
  0x11   :  { %473 = vmatprep.subr.bf16.mxu0 %v517_v0 }
  0x13   :  { %458 = vmatpush3.bf16.msra.mxu1 %v501_v8 }
  0x14   :  { %459 = vmatprep.subr.bf16.mxu1 %v517_v0  ;;  %474 = vmatpush3.bf16.msra.mxu0 %v507_v22 }
  0x15   :  { %475 = vmatprep.subr.bf16.mxu0 %v517_v0 }
  0x17   :  { %460 = vmatpush3.bf16.msra.mxu1 %v502_v9 }
  0x18   :  { %461 = vmatprep.subr.bf16.mxu1 %v517_v0  ;;  %476 = vmatpush3.bf16.msra.mxu0 %v508_v23 }
  0x19   :  { %481 = vmatprep.subr.bf16.mxu0 %v517_v0 }
  0x1b   :  { %462 = vmatpush3.bf16.msra.mxu1 %v503_v10 }
  0x1c   :  { %463 = vmatprep.subr.bf16.mxu1 %v517_v0 }
  0x1f   :  { %464 = vmatpush3.bf16.msra.mxu1 %v504_v11 }
  0xca   :  { %v95_v15 = vpop.f32.mrf.mxu0 }
  0xcb   :  { %v96_v16 = vadd.f32 %v394_v14, %v95_v15 }
  0xcc   :  { %v447_v17 = vpop.f32.mrf.mxu0 }
  0xcd   :  { %v101_v18 = vmax.f32 %v96_v16, 0.0 }
  0xce   :  { %v98_v19 = vpop.f32.mrf.mxu0 }
  0xcf   :  { %v102_v20 = vpack.c.bf16 %v101_v18, %v101_v18 }
  0xd0   :  { %v448_v21 = vpop.f32.mrf.mxu0 }
  0xd1   :  { %466 = vmatmul.mubr.bf16.vlgmr.msra.gmra.mxu1 %v102_v20 }
 0x191   :  { %v208_v25 = vpop.f32.mrf.mxu1 }
 0x192   :  { %v209_v26 = vadd.f32 %v398_v24, %v208_v25 }
 0x193   :  { %v467_v27 = vpop.f32.mrf.mxu1 }
 0x194   :  { %v214_v28 = vmax.f32 %v209_v26, 0.0 }
 0x195   :  { %v211_v29 = vpop.f32.mrf.mxu1 }
 0x196   :  { %v215_v31 = vpack.c.bf16 %v214_v28, %v214_v28 }
 0x197   :  { %v468_v32 = vpop.f32.mrf.mxu1 }
 0x198   :  { %478 = vmatmul.mubr.msk.bf16.vlgmr.msra.gmra.mxu0 %vm255_vm2, %v215_v31 }
 0x199   :  { %482 = vmatpush3.bf16.msra.mxu0 %v509_v30  ;;  %489 = vmatprep.mubr.msk.bf16.mxu0 %vm518_vm0, %v517_v0 }
 0x19a   :  { %483 = vmatprep.subr.bf16.mxu0 %v517_v0 }
 0x19d   :  { %484 = vmatpush3.bf16.msra.mxu0 %v510_v33 }
 0x19e   :  { %485 = vmatprep.subr.bf16.mxu0 %v517_v0 }
 0x1a1   :  { %486 = vmatpush3.bf16.msra.mxu0 %v511_v34 }
 0x1a2   :  { %487 = vmatprep.subr.bf16.mxu0 %v517_v0 }
 0x1a5   :  { %488 = vmatpush3.bf16.msra.mxu0 %v512_v35 }
 0x258   :  { %v293_v37 = vpop.f32.mrf.mxu0 }
 0x259   :  { %v294_v38 = vadd.f32 %v407_v36, %v293_v37 }
 0x25a   :  { %v479_v39 = vpop.f32.mrf.mxu0 }
 0x25b   :  { %v299_v40 = vmax.f32 %v294_v38, 0.0 }
 0x25c   :  { %v296_v41 = vpop.f32.mrf.mxu0 }
 0x25d   :  { %v300_v42 = vpack.c.bf16 %v299_v40, %v299_v40 }
 0x25e   :  { %v480_v43 = vpop.f32.mrf.mxu0 }
 0x25f   :  { %490 = vmatmul.mubr.msk.bf16.vlgmr.msra.gmra.mxu0 %vm255_vm2, %v300_v42 }
 0x31f   :  { %v377_v45 = vpop.f32.mrf.mxu0 }
 0x320   :  { %v378_v46 = vadd.f32 %v413_v44, %v377_v45 }
 0x321   :  { %v491_v47 = vpop.f32.mrf.mxu0 }
 0x322   :  { %v383_v48 = vsub.f32 0.0, %v378_v46 }
 0x323   :  { %v380_v49 = vpop.f32.mrf.mxu0 }
 0x324   :  { %v384_v50 = vmul.f32 1.442695, %v383_v48 }
 0x325   :  { %v492_v51 = vpop.f32.mrf.mxu0 }
 0x326   :  { %513 = vpow2.f32 %v384_v50 }
 0x333   :  { %v514_v52 = vpop.eup %513 }
 0x334   :  { %v386_v53 = vadd.f32 1.0, %v514_v52 }
 0x336   :  { %515 = vrcp.f32 %v386_v53 }
 0x343   :  { %v516_v54 = vpop.eup %515 }
 0x344   :  { %389 = vst.msk [vmem:[%s678_s9] sm:$0xff] %vm388_vm3, %v516_v54 }

</bundles_post_ra>
